<compile_context>
chip_gen: v7x
topology: tpu7x:2x2x1
jax: 0.10.0
libtpu: 0.0.40
codegen_flags: <defaults>
</compile_context>

<pallas_src>
import jax
import jax.numpy as jnp
from jax.experimental import pallas as pl
from jax.experimental.pallas import tpu as pltpu

EPS = 1e-06
_LANE = 128
_SUBLANE = 8


def _round_up(x, m):
    return ((x + m - 1) // m) * m


def _realnvp_kernel(zk_ref, zc_ref, h_ref,
                    w1z_ref, w1h_ref, b1_ref,
                    w2t_ref, w2s_ref, w2sum_ref,
                    b2t_ref, b2s_ref, b2sum_ref,
                    znew_ref, ldj_ref):
    z_keep = zk_ref[...]                        # (bt, d_keep)
    z_change = zc_ref[...]                      # (bt, d_change)

    # conditioner MLP; first layer split over the [z_keep | h] rows of w1,
    # so the (B, d_keep+Dh) concat is never materialized.
    h1 = jnp.dot(z_keep, w1z_ref[...], preferred_element_type=jnp.float32)
    h1 = h1 + jnp.dot(h_ref[...], w1h_ref[...],
                      preferred_element_type=jnp.float32)
    h1 = jnp.tanh(h1 + b1_ref[...])

    # second layer split into the t / s column halves (== torch .chunk(2, -1))
    t = jnp.dot(h1, w2t_ref[...],
                preferred_element_type=jnp.float32) + b2t_ref[...]
    s = jnp.dot(h1, w2s_ref[...],
                preferred_element_type=jnp.float32) + b2s_ref[...]

    # use_softplus=False: s_activation(s) = exp(s) + EPS; write only z_new
    znew_ref[...] = (jnp.exp(s) + EPS) * z_change + t

    # log-det: sum_j s_j == h1 @ sum_j(w2_s[:, j]) + sum_j(b2_s)  -> MXU dot
    ldj_col = jnp.dot(h1, w2sum_ref[...],
                      preferred_element_type=jnp.float32) + b2sum_ref[...]
    bt = z_keep.shape[0]
    # degenerate reduce (width 1) + reshape -> lane-dense (1, 1, bt) store
    ldj_ref[...] = jnp.sum(ldj_col, axis=-1).reshape(1, 1, bt)


def conditional_realnvp_forward(z, h, params, *, batch_tile=1024):
    """Forward pass of ConditionalRealNVPLayer.

    z: (B, D) float32, h: (B, Dh) float32.
    params = (w1, b1, w2, b2) with w1: (d_keep+Dh, hidden), w2: (hidden, 2*d_change).
    Returns (z_out (B, D), log_det_jacobian (B,)).
    """
    w1, b1, w2, b2 = params
    B, D = z.shape
    Dh = h.shape[-1]
    d_keep = D // 2 + D % 2                     # constant_block_size=None branch
    d_change = D - d_keep
    hidden = w1.shape[1]
    assert w1.shape == (d_keep + Dh, hidden)
    assert w2.shape == (hidden, 2 * d_change)
    assert d_change >= 1

    # 128-aligned batch tile; keep >=2 grid steps when B allows it (v7x 2 TCs)
    bt = _round_up(batch_tile, _LANE)
    bt = min(bt, _round_up(pl.cdiv(B, 2), _LANE))
    bt = max(bt, _LANE)
    num_tiles = pl.cdiv(B, bt)
    Bp = num_tiles * bt

    # split z in the wrapper (free XLA strided slice) so the kernel never
    # lane-slices at the non-128-aligned d_keep boundary.
    z_keep = z[:, :d_keep]
    z_change = z[:, d_keep:]
    zk_p, zc_p, h_p = z_keep, z_change, h
    if Bp != B:                                 # ragged batch -> pad, slice back
        pad = ((0, Bp - B), (0, 0))
        zk_p = jnp.pad(z_keep, pad)
        zc_p = jnp.pad(z_change, pad)
        h_p = jnp.pad(h, pad)

    # split conditioner weights once, outside the kernel
    w1_z = w1[:d_keep]                          # (d_keep, hidden)
    w1_h = w1[d_keep:]                          # (Dh, hidden)
    b1_2d = b1.reshape(1, hidden)
    w2_t = w2[:, :d_change]                     # (hidden, d_change)
    w2_s = w2[:, d_change:]                     # (hidden, d_change)
    b2_t = b2[:d_change].reshape(1, d_change)
    b2_s = b2[d_change:].reshape(1, d_change)
    w2_s_sum = jnp.sum(w2_s, axis=-1, keepdims=True)   # (hidden, 1) -> MXU ldj
    b2_s_sum = jnp.sum(b2_s).reshape(1, 1)              # (1, 1)

    # VMEM budget from 128-lane / 8-sublane padded blocks, double-buffered
    def _pb(r, c):
        return _round_up(max(r, 1), _SUBLANE) * _round_up(max(c, 1), _LANE) * 4
    block_bytes = (_pb(bt, d_keep) + _pb(bt, d_change) + _pb(bt, Dh)
                   + _pb(bt, d_change) + _pb(1, bt)
                   + _pb(d_keep, hidden) + _pb(Dh, hidden) + _pb(1, hidden)
                   + 2 * _pb(hidden, d_change) + _pb(hidden, 1)
                   + 2 * _pb(1, d_change) + _pb(1, 1))
    vmem_needed = 2 * block_bytes
    vmem_limit = None
    if vmem_needed > (24 << 20):                # only raise above scoped default
        vmem_limit = min(vmem_needed * 3 // 2 + (4 << 20), 100 << 20)

    cost = pl.CostEstimate(
        flops=2 * Bp * ((d_keep + Dh) * hidden + hidden * (2 * d_change + 1)),
        transcendentals=Bp * (hidden + d_change),
        bytes_accessed=4 * (Bp * (D + Dh + d_change + 1)
                            + (d_keep + Dh) * hidden
                            + hidden * (2 * d_change + 1)
                            + hidden + 2 * d_change + 1),
    )

    z_new, ldj = pl.pallas_call(
        _realnvp_kernel,
        out_shape=(
            jax.ShapeDtypeStruct((Bp, d_change), jnp.float32),
            jax.ShapeDtypeStruct((num_tiles, 1, bt), jnp.float32),
        ),
        grid_spec=pltpu.PrefetchScalarGridSpec(
            num_scalar_prefetch=0,
            grid=(num_tiles,),
            in_specs=[
                pl.BlockSpec((bt, d_keep), lambda i: (i, 0)),
                pl.BlockSpec((bt, d_change), lambda i: (i, 0)),
                pl.BlockSpec((bt, Dh), lambda i: (i, 0)),
                pl.BlockSpec((d_keep, hidden), lambda i: (0, 0)),
                pl.BlockSpec((Dh, hidden), lambda i: (0, 0)),
                pl.BlockSpec((1, hidden), lambda i: (0, 0)),
                pl.BlockSpec((hidden, d_change), lambda i: (0, 0)),
                pl.BlockSpec((hidden, d_change), lambda i: (0, 0)),
                pl.BlockSpec((hidden, 1), lambda i: (0, 0)),
                pl.BlockSpec((1, d_change), lambda i: (0, 0)),
                pl.BlockSpec((1, d_change), lambda i: (0, 0)),
                pl.BlockSpec((1, 1), lambda i: (0, 0)),
            ],
            out_specs=[
                pl.BlockSpec((bt, d_change), lambda i: (i, 0)),
                pl.BlockSpec((1, 1, bt), lambda i: (i, 0, 0)),
            ],
        ),
        compiler_params=pltpu.CompilerParams(
            dimension_semantics=("parallel",),
            vmem_limit_bytes=vmem_limit),
        cost_estimate=cost,
    )(zk_p, zc_p, h_p, w1_z, w1_h, b1_2d,
      w2_t, w2_s, w2_s_sum, b2_t, b2_s, b2_s_sum)

    # Assemble z_out outside the kernel (pass-through columns untouched).
    # Donate z at the call site if an in-place update is desired.
    z_out = jax.lax.dynamic_update_slice(z, z_new[:B], (0, d_keep))
    return z_out, ldj.reshape(Bp)[:B]


def _reference_forward(z, h, params):
    """Pure-JAX reference matching the PyTorch module semantics."""
    w1, b1, w2, b2 = params
    D = z.shape[-1]
    d_keep = D // 2 + D % 2
    d_change = D - d_keep
    z_keep, z_change = z[..., :d_keep], z[..., d_keep:]
    zh = jnp.concatenate([z_keep, h], axis=-1)
    h1 = jnp.tanh(zh @ w1 + b1)
    ts = h1 @ w2 + b2
    t, s = ts[..., :d_change], ts[..., d_change:]
    z_new = (jnp.exp(s) + EPS) * z_change + t
    ldj = jnp.sum(s, axis=-1)
    return jnp.concatenate([z_keep, z_new], axis=-1), ldj


def _make_case(key, B, D, Dh, hidden):
    d_keep = D // 2 + D % 2
    d_change = D - d_keep
    kz, kh, k1, k2, k3, k4 = jax.random.split(key, 6)
    z = jax.random.normal(kz, (B, D), dtype=jnp.float32)
    h = jax.random.normal(kh, (B, Dh), dtype=jnp.float32)
    w1 = 0.1 * jax.random.normal(k1, (d_keep + Dh, hidden), dtype=jnp.float32)
    b1 = 0.01 * jax.random.normal(k2, (hidden,), dtype=jnp.float32)
    w2 = 0.1 * jax.random.normal(k3, (hidden, 2 * d_change), dtype=jnp.float32)
    b2 = 0.01 * jax.random.normal(k4, (2 * d_change,), dtype=jnp.float32)
    return z, h, (w1, b1, w2, b2)


if __name__ == "__main__":
    key = jax.random.PRNGKey(0)
    k_a, k_b = jax.random.split(key)

    # case 1: even D, B=256 -> bt=128, 2 grid steps (both v7x TCs used)
    z, h, params = _make_case(k_a, B=256, D=16, Dh=16, hidden=32)
    z_out, ldj = conditional_realnvp_forward(z, h, params)
    jax.block_until_ready((z_out, ldj))
    z_ref, ldj_ref = _reference_forward(z, h, params)
    assert z_out.shape == (256, 16) and ldj.shape == (256,)
    assert jnp.allclose(z_out, z_ref, atol=1e-5, rtol=1e-5)
    assert jnp.allclose(ldj, ldj_ref, atol=1e-5, rtol=1e-5)

    # case 2: odd D (ceil split convention) and ragged batch (padding path)
    z2, h2, params2 = _make_case(k_b, B=100, D=15, Dh=8, hidden=32)
    z_out2, ldj2 = conditional_realnvp_forward(z2, h2, params2)
    jax.block_until_ready((z_out2, ldj2))
    z_ref2, ldj_ref2 = _reference_forward(z2, h2, params2)
    assert z_out2.shape == (100, 15) and ldj2.shape == (100,)
    assert jnp.allclose(z_out2, z_ref2, atol=1e-5, rtol=1e-5)
    assert jnp.allclose(ldj2, ldj_ref2, atol=1e-5, rtol=1e-5)

    # TODO(synk): the inverse-flow layer (_InverseConditionalRealNVPLayer) and
    # the use_softplus=True branch are not kernelized; only the forward
    # transformation + log-det is implemented here.
    print("KERNEL_OK")
</pallas_src>

<mosaic_0001>
module attributes {stable_mosaic.version = 11 : i64} {
  func.func @_realnvp_kernel(%arg0: i32, %arg1: memref<128x8xf32, #tpu.memory_space<vmem>>, %arg2: memref<128x8xf32, #tpu.memory_space<vmem>>, %arg3: memref<128x16xf32, #tpu.memory_space<vmem>>, %arg4: memref<8x32xf32, #tpu.memory_space<vmem>>, %arg5: memref<16x32xf32, #tpu.memory_space<vmem>>, %arg6: memref<1x32xf32, #tpu.memory_space<vmem>>, %arg7: memref<32x8xf32, #tpu.memory_space<vmem>>, %arg8: memref<32x8xf32, #tpu.memory_space<vmem>>, %arg9: memref<32x1xf32, #tpu.memory_space<vmem>>, %arg10: memref<1x8xf32, #tpu.memory_space<vmem>>, %arg11: memref<1x8xf32, #tpu.memory_space<vmem>>, %arg12: memref<1x1xf32, #tpu.memory_space<vmem>>, %arg13: memref<128x8xf32, #tpu.memory_space<vmem>>, %arg14: memref<1x1x128xf32, #tpu.memory_space<vmem>>) attributes {dimension_semantics = [#tpu.dimension_semantics<parallel>], iteration_bounds = array<i64: 2>, scalar_prefetch = 0 : i64, scratch_operands = 0 : i64, tpu.core_type = #tpu.core_type<tc>, window_params = [{transform_indices = @transform_0, window_bounds = array<i64: 128, 8>}, {transform_indices = @transform_1, window_bounds = array<i64: 128, 8>}, {transform_indices = @transform_2, window_bounds = array<i64: 128, 16>}, {pipeline_mode = #tpu.pipeline_mode<synchronous>, transform_indices = @transform_3, window_bounds = array<i64: 8, 32>}, {pipeline_mode = #tpu.pipeline_mode<synchronous>, transform_indices = @transform_4, window_bounds = array<i64: 16, 32>}, {pipeline_mode = #tpu.pipeline_mode<synchronous>, transform_indices = @transform_5, window_bounds = array<i64: 1, 32>}, {pipeline_mode = #tpu.pipeline_mode<synchronous>, transform_indices = @transform_6, window_bounds = array<i64: 32, 8>}, {pipeline_mode = #tpu.pipeline_mode<synchronous>, transform_indices = @transform_7, window_bounds = array<i64: 32, 8>}, {pipeline_mode = #tpu.pipeline_mode<synchronous>, transform_indices = @transform_8, window_bounds = array<i64: 32, 1>}, {pipeline_mode = #tpu.pipeline_mode<synchronous>, transform_indices = @transform_9, window_bounds = array<i64: 1, 8>}, {pipeline_mode = #tpu.pipeline_mode<synchronous>, transform_indices = @transform_10, window_bounds = array<i64: 1, 8>}, {pipeline_mode = #tpu.pipeline_mode<synchronous>, transform_indices = @transform_11, window_bounds = array<i64: 1, 1>}, {transform_indices = @transform_12, window_bounds = array<i64: 128, 8>}, {transform_indices = @transform_13, window_bounds = array<i64: 1, 1, 128>}]} {
    %c0 = arith.constant 0 : index
    %c0_0 = arith.constant 0 : index
    %0 = vector.load %arg1[%c0, %c0_0] : memref<128x8xf32, #tpu.memory_space<vmem>>, vector<128x8xf32>
    %c0_1 = arith.constant 0 : index
    %c0_2 = arith.constant 0 : index
    %1 = vector.load %arg2[%c0_1, %c0_2] : memref<128x8xf32, #tpu.memory_space<vmem>>, vector<128x8xf32>
    %c0_3 = arith.constant 0 : index
    %c0_4 = arith.constant 0 : index
    %2 = vector.load %arg4[%c0_3, %c0_4] : memref<8x32xf32, #tpu.memory_space<vmem>>, vector<8x32xf32>
    %cst = arith.constant dense<0.000000e+00> : vector<128x32xf32>
    %3 = tpu.matmul %0, %2, %cst {dimension_numbers = #tpu.dot_dimension_numbers<[1], [0], [0], [1], [0, 0, 1, 1], [], []>} : vector<128x8xf32>, vector<8x32xf32>, vector<128x32xf32> -> vector<128x32xf32>
    %c0_5 = arith.constant 0 : index
    %c0_6 = arith.constant 0 : index
    %4 = vector.load %arg3[%c0_5, %c0_6] : memref<128x16xf32, #tpu.memory_space<vmem>>, vector<128x16xf32>
    %c0_7 = arith.constant 0 : index
    %c0_8 = arith.constant 0 : index
    %5 = vector.load %arg5[%c0_7, %c0_8] : memref<16x32xf32, #tpu.memory_space<vmem>>, vector<16x32xf32>
    %cst_9 = arith.constant dense<0.000000e+00> : vector<128x32xf32>
    %6 = tpu.matmul %4, %5, %cst_9 {dimension_numbers = #tpu.dot_dimension_numbers<[1], [0], [0], [1], [0, 0, 1, 1], [], []>} : vector<128x16xf32>, vector<16x32xf32>, vector<128x32xf32> -> vector<128x32xf32>
    %7 = arith.addf %3, %6 : vector<128x32xf32>
    %c0_10 = arith.constant 0 : index
    %c0_11 = arith.constant 0 : index
    %8 = vector.load %arg6[%c0_10, %c0_11] : memref<1x32xf32, #tpu.memory_space<vmem>>, vector<1x32xf32>
    %9 = vector.broadcast %8 : vector<1x32xf32> to vector<128x32xf32>
    %10 = arith.addf %7, %9 : vector<128x32xf32>
    %11 = math.tanh %10 : vector<128x32xf32>
    %c0_12 = arith.constant 0 : index
    %c0_13 = arith.constant 0 : index
    %12 = vector.load %arg7[%c0_12, %c0_13] : memref<32x8xf32, #tpu.memory_space<vmem>>, vector<32x8xf32>
    %cst_14 = arith.constant dense<0.000000e+00> : vector<128x8xf32>
    %13 = tpu.matmul %11, %12, %cst_14 {dimension_numbers = #tpu.dot_dimension_numbers<[1], [0], [0], [1], [0, 0, 1, 1], [], []>} : vector<128x32xf32>, vector<32x8xf32>, vector<128x8xf32> -> vector<128x8xf32>
    %c0_15 = arith.constant 0 : index
    %c0_16 = arith.constant 0 : index
    %14 = vector.load %arg10[%c0_15, %c0_16] : memref<1x8xf32, #tpu.memory_space<vmem>>, vector<1x8xf32>
    %15 = vector.broadcast %14 : vector<1x8xf32> to vector<128x8xf32>
    %16 = arith.addf %13, %15 : vector<128x8xf32>
    %c0_17 = arith.constant 0 : index
    %c0_18 = arith.constant 0 : index
    %17 = vector.load %arg8[%c0_17, %c0_18] : memref<32x8xf32, #tpu.memory_space<vmem>>, vector<32x8xf32>
    %cst_19 = arith.constant dense<0.000000e+00> : vector<128x8xf32>
    %18 = tpu.matmul %11, %17, %cst_19 {dimension_numbers = #tpu.dot_dimension_numbers<[1], [0], [0], [1], [0, 0, 1, 1], [], []>} : vector<128x32xf32>, vector<32x8xf32>, vector<128x8xf32> -> vector<128x8xf32>
    %c0_20 = arith.constant 0 : index
    %c0_21 = arith.constant 0 : index
    %19 = vector.load %arg11[%c0_20, %c0_21] : memref<1x8xf32, #tpu.memory_space<vmem>>, vector<1x8xf32>
    %20 = vector.broadcast %19 : vector<1x8xf32> to vector<128x8xf32>
    %21 = arith.addf %18, %20 : vector<128x8xf32>
    %22 = math.exp %21 : vector<128x8xf32>
    %cst_22 = arith.constant 9.99999997E-7 : f32
    %23 = vector.broadcast %cst_22 : f32 to vector<128x8xf32>
    %24 = arith.addf %22, %23 : vector<128x8xf32>
    %25 = arith.mulf %24, %1 : vector<128x8xf32>
    %26 = arith.addf %25, %16 : vector<128x8xf32>
    %c0_23 = arith.constant 0 : index
    %c0_24 = arith.constant 0 : index
    %27 = vector.load %arg13[%c0_23, %c0_24] : memref<128x8xf32, #tpu.memory_space<vmem>>, vector<128x8xf32>
    tpu.vector_store %arg13[%c0_23, %c0_24], %26 {strides = array<i32>} : memref<128x8xf32, #tpu.memory_space<vmem>>, vector<128x8xf32>,
    %c0_25 = arith.constant 0 : index
    %c0_26 = arith.constant 0 : index
    %28 = vector.load %arg9[%c0_25, %c0_26] : memref<32x1xf32, #tpu.memory_space<vmem>>, vector<32x1xf32>
    %cst_27 = arith.constant dense<0.000000e+00> : vector<128x1xf32>
    %29 = tpu.matmul %11, %28, %cst_27 {dimension_numbers = #tpu.dot_dimension_numbers<[1], [0], [0], [1], [0, 0, 1, 1], [], []>} : vector<128x32xf32>, vector<32x1xf32>, vector<128x1xf32> -> vector<128x1xf32>
    %c0_28 = arith.constant 0 : index
    %c0_29 = arith.constant 0 : index
    %30 = vector.load %arg12[%c0_28, %c0_29] : memref<1x1xf32, #tpu.memory_space<vmem>>, vector<1x1xf32>
    %31 = vector.broadcast %30 : vector<1x1xf32> to vector<128x1xf32>
    %32 = arith.addf %29, %31 : vector<128x1xf32>
    %cst_30 = arith.constant dense<0.000000e+00> : vector<128xf32>
    %33 = vector.multi_reduction <add>, %32, %cst_30 [1] : vector<128x1xf32> to vector<128xf32>
    %34 = vector.shape_cast %33 : vector<128xf32> to vector<1x1x128xf32>
    %c0_31 = arith.constant 0 : index
    %c0_32 = arith.constant 0 : index
    %c0_33 = arith.constant 0 : index
    %35 = vector.load %arg14[%c0_31, %c0_32, %c0_33] : memref<1x1x128xf32, #tpu.memory_space<vmem>>, vector<1x1x128xf32>
    tpu.vector_store %arg14[%c0_31, %c0_32, %c0_33], %34 {strides = array<i32>} : memref<1x1x128xf32, #tpu.memory_space<vmem>>, vector<1x1x128xf32>,
    return
  }
  func.func @transform_0(%arg0: i32) -> (i32, i32) {
    %c0_i32 = arith.constant 0 : i32
    %c0_i32_0 = arith.constant 0 : i32
    return %arg0, %c0_i32 : i32, i32
  }
  func.func @transform_1(%arg0: i32) -> (i32, i32) {
    %c0_i32 = arith.constant 0 : i32
    %c0_i32_0 = arith.constant 0 : i32
    return %arg0, %c0_i32 : i32, i32
  }
  func.func @transform_2(%arg0: i32) -> (i32, i32) {
    %c0_i32 = arith.constant 0 : i32
    %c0_i32_0 = arith.constant 0 : i32
    return %arg0, %c0_i32 : i32, i32
  }
  func.func @transform_3(%arg0: i32) -> (i32, i32) {
    %c0_i32 = arith.constant 0 : i32
    %c0_i32_0 = arith.constant 0 : i32
    %c0_i32_1 = arith.constant 0 : i32
    return %c0_i32, %c0_i32_0 : i32, i32
  }
  func.func @transform_4(%arg0: i32) -> (i32, i32) {
    %c0_i32 = arith.constant 0 : i32
    %c0_i32_0 = arith.constant 0 : i32
    %c0_i32_1 = arith.constant 0 : i32
    return %c0_i32, %c0_i32_0 : i32, i32
  }
  func.func @transform_5(%arg0: i32) -> (i32, i32) {
    %c0_i32 = arith.constant 0 : i32
    %c0_i32_0 = arith.constant 0 : i32
    %c0_i32_1 = arith.constant 0 : i32
    return %c0_i32, %c0_i32_0 : i32, i32
  }
  func.func @transform_6(%arg0: i32) -> (i32, i32) {
    %c0_i32 = arith.constant 0 : i32
    %c0_i32_0 = arith.constant 0 : i32
    %c0_i32_1 = arith.constant 0 : i32
    return %c0_i32, %c0_i32_0 : i32, i32
  }
  func.func @transform_7(%arg0: i32) -> (i32, i32) {
    %c0_i32 = arith.constant 0 : i32
    %c0_i32_0 = arith.constant 0 : i32
    %c0_i32_1 = arith.constant 0 : i32
    return %c0_i32, %c0_i32_0 : i32, i32
  }
  func.func @transform_8(%arg0: i32) -> (i32, i32) {
    %c0_i32 = arith.constant 0 : i32
    %c0_i32_0 = arith.constant 0 : i32
    %c0_i32_1 = arith.constant 0 : i32
    return %c0_i32, %c0_i32_0 : i32, i32
  }
  func.func @transform_9(%arg0: i32) -> (i32, i32) {
    %c0_i32 = arith.constant 0 : i32
    %c0_i32_0 = arith.constant 0 : i32
    %c0_i32_1 = arith.constant 0 : i32
    return %c0_i32, %c0_i32_0 : i32, i32
  }
  func.func @transform_10(%arg0: i32) -> (i32, i32) {
    %c0_i32 = arith.constant 0 : i32
    %c0_i32_0 = arith.constant 0 : i32
    %c0_i32_1 = arith.constant 0 : i32
    return %c0_i32, %c0_i32_0 : i32, i32
  }
  func.func @transform_11(%arg0: i32) -> (i32, i32) {
    %c0_i32 = arith.constant 0 : i32
    %c0_i32_0 = arith.constant 0 : i32
    %c0_i32_1 = arith.constant 0 : i32
    return %c0_i32, %c0_i32_0 : i32, i32
  }
  func.func @transform_12(%arg0: i32) -> (i32, i32) {
    %c0_i32 = arith.constant 0 : i32
    %c0_i32_0 = arith.constant 0 : i32
    return %arg0, %c0_i32 : i32, i32
  }
  func.func @transform_13(%arg0: i32) -> (i32, i32, i32) {
    %c0_i32 = arith.constant 0 : i32
    %c0_i32_0 = arith.constant 0 : i32
    %c0_i32_1 = arith.constant 0 : i32
    return %arg0, %c0_i32, %c0_i32_0 : i32, i32, i32
  }
}

</mosaic_0001>

<bundles_post_ra>
// kernel: tpu_custom_call.1
= control target key start
LH: loop header
LB: loop body
LE: loop exit
PB: predicated region body
PF: predicated region fallthrough
CT: control target
= control target key end

     0   :  { %s3074_s0 = inlined_call_operand.vmem [shape: f32[256,8], index: 0, kind: input, shape index: {}]   ;;  %s3075_s1 = inlined_call_operand.vmem [shape: f32[256,8], index: 1, kind: input, shape index: {}]   ;;  %s3076_s2 = inlined_call_operand.vmem [shape: f32[256,16], index: 2, kind: input, shape index: {}]   ;;  %s3077_s3 = inlined_call_operand.vmem [shape: f32[8,32], index: 3, kind: input, shape index: {}]   ;;  %s3078_s4 = inlined_call_operand.vmem [shape: f32[16,32], index: 4, kind: input, shape index: {}]   ;;  %s3079_s5 = inlined_call_operand.vmem [shape: f32[1,32], index: 5, kind: input, shape index: {}]   ;;  %s3080_s6 = inlined_call_operand.vmem [shape: f32[32,8], index: 6, kind: input, shape index: {}]   ;;  %s3081_s7 = inlined_call_operand.vmem [shape: f32[32,8], index: 7, kind: input, shape index: {}]   ;;  %s3082_s8 = inlined_call_operand.vmem [shape: f32[32,1], index: 8, kind: input, shape index: {}]   ;;  %s3083_s9 = inlined_call_operand.vmem [shape: f32[1,8], index: 9, kind: input, shape index: {}]   ;;  %s3084_s10 = inlined_call_operand.vmem [shape: f32[1,8], index: 10, kind: input, shape index: {}]   ;;  %s3085_s11 = inlined_call_operand.<no memory space> [shape: f32[1,1], index: 11, kind: input, shape index: {}]   ;;  %s3086_s12 = inlined_call_operand.vmem [shape: f32[256,8], index: 12, kind: output, shape index: {0}]   ;;  %s3087_s13 = inlined_call_operand.hbm [shape: f32[2,1,128], index: 13, kind: output, shape index: {1}]  }
   0x1   :  { %3088 = sst [smem:[#allocation6_spill]] %s3074_s0  ;;  %v19_v0 = vstv %s3085_s11 }
   0x2   :  { %3089 = sst [smem:[#allocation7_spill]] %s3075_s1  ;;  %20 = vst [vmem:[#allocation2] sm:$0x1] %v19_v0 }
   0x3   :  { %21 = vsyncpa [#allocation4], 0 }
   0x4   :  { %23 = vsyncpa [#allocation4 + $0x1], 0  ;;  %s2545_s27 = smov 0   ;;  %s2547_s28 = smov 0  }
   0x5   :  { %s2549_s29 = smov 0   ;;  %s2551_s30 = smov 0  }
   0x6 LB: > { %s1909_s11 = sadd.s32 4294967295, %s2468_s30   ;;  %s1910_s14 = sadd.s32 4294967294, %s2468_s30   ;;  %s2468_s30 = sphi %s2551_s30, %s3097_s30   ;;  %s2464_s29 = sphi %s2549_s29, %s3096_s29   ;;  %s2460_s28 = sphi %s2547_s28, %s3095_s28   ;;  %s2456_s27 = sphi %s2545_s27, %s3094_s27  }
   0x7   : > { %s2568_s15 = sadd.s32 1, %s2468_s30   ;;  %s329_s16 = sadd.s32 1, %s2464_s29 }
   0x8   : > { %s326_s17 = ssub.s32 %s2468_s30, %s2568_s15  ;;  %p339_p0 = scmp.ne.s32.totalorder %s2464_s29, %s2460_s28 }
   0x9   : > { %p327_p1 = scmp.eq.s32.totalorder %s326_s17, 0  ;;  %p340_p2 = scmp.eq.s32.totalorder %s1909_s11, 1 }
   0xa   : > { %p345_p3 = scmp.ne.s32.totalorder %s2460_s28, %s2456_s27  ;;  %p346_p4 = scmp.eq.s32.totalorder %s1910_s14, 1 }
   0xb   : > { %s2578_s18 = scalar_select %p327_p1, %s2464_s29, %s329_s16  }
   0xc   : > { %p2580_p5 = por %p340_p2, %p339_p0  ;;  %p2584_p6 = por %p346_p4, %p345_p3 }
   0xd   : > { %p1913_p7 = scmp.ge.s32.totalorder %s2468_s30, 1  ;;  %p418_p8 = scmp.lt.s32.totalorder %s2468_s30, 3 }
   0xf   : > { %p419_p9 = pnand %p1913_p7, %p418_p8 }
  0x10   : > { %v549_v1 = vld [vmem:[%s3078_s4] sm:$0xff] (!%p419_p9)  ;;  %v550_v2 = vld [vmem:[%s3078_s4 + $0x8] sm:$0xff] (!%p419_p9)  ;;  %s2596_s25 = sshll.u32 (!%p419_p9), %s1909_s11, 4  ;;  %vm551_vm0 = vcmask (!%p419_p9), 130048   ;;  %s3092_s0 = sld [smem:[#allocation6_spill]] (!%p419_p9)  ;;  %vm745_vm1 = vcmask (!%p419_p9), 64512  }
  0x11   : > { %422 = sbr.rel (%p419_p9) target bundleno = 664 (0x298), region = 68  ;;  %v2254_v3 = vpack.c.bf16 (!%p419_p9), %v550_v2, %v549_v1  ;;  %p477_p10 = scmp.lt.s32.totalorder (!%p419_p9), %s2596_s25, 31  ;;  %v532_v4 = vld [vmem:[%s3077_s3] sm:$0xff] (!%p419_p9)  ;;  %v1436_v6 = vld [vmem:[%s3082_s8 + $0x8] sm:$0xff] (!%p419_p9)  ;;  %v1437_v24 = vld [vmem:[%s3082_s8 + $0x10] sm:$0xff] (!%p419_p9)  ;;  %vm989_vm2 = vcmask (!%p419_p9), 261120  }
  0x12   : > { %v1435_v5 = vld [vmem:[%s3082_s8] sm:$0xff] (!%p419_p9)  ;;  %v1438_v25 = vld [vmem:[%s3082_s8 + $0x18] sm:$0xff] (!%p419_p9)  ;;  %v979_v44 = vld [vmem:[%s3080_s6 + $0x8] sm:$0xff] (!%p419_p9)  ;;  %s3093_s1 = sld [smem:[#allocation7_spill]] (!%p419_p9)  ;;  %vm1682_vm3 = vcmask (!%p419_p9), 130112   ;;  %vm1689_vm4 = vcmask (!%p419_p9), 195712   ;;  %s3032_s11 = scalar_lea.hbm (!%p419_p9), %s3087_s13, %s2596_s25 }
  0x13   : > { %2255 = vmatprep.subr.bf16.mxu0 (!%p419_p9), %v2254_v3  ;;  %2282 = vmatprep.subr.bf16.mxu1 (!%p419_p9), %v2254_v3  ;;  %v2274_v10 = vpack.c.bf16 (!%p419_p9), %v1436_v6, %v1435_v5  ;;  %v2278_v29 = vpack.c.bf16 (!%p419_p9), %v1438_v25, %v1437_v24  ;;  %v978_v43 = vld [vmem:[%s3080_s6] sm:$0xff] (!%p419_p9)  ;;  %v980_v46 = vld [vmem:[%s3080_s6 + $0x10] sm:$0xff] (!%p419_p9)  ;;  %v981_v47 = vld [vmem:[%s3080_s6 + $0x18] sm:$0xff] (!%p419_p9)  ;;  %vm1696_vm5 = vcmask (!%p419_p9), 261312   ;;  %vm1703_vm6 = vcmask (!%p419_p9), 326912  }
  0x14   : > { %2257 = vmatpush3.bf16.msra.mxu0 (!%p419_p9), %v2254_v3  ;;  %2283 = vmatpush3.bf16.msra.mxu1 (!%p419_p9), %v2254_v3  ;;  %v2258_v45 = vpack.c.bf16 (!%p419_p9), %v979_v44, %v978_v43  ;;  %v2262_v48 = vpack.c.bf16 (!%p419_p9), %v981_v47, %v980_v46  ;;  %v1183_v49 = vld [vmem:[%s3081_s7] sm:$0xff] (!%p419_p9)  ;;  %v1184_v50 = vld [vmem:[%s3081_s7 + $0x8] sm:$0xff] (!%p419_p9)  ;;  %vm1710_vm7 = vcmask (!%p419_p9), 392512   ;;  %vm1717_vm8 = vcmask (!%p419_p9), 458112  }
  0x15   : > { %2132 = vmatprep.subr.mxu0 (!%p419_p9), %v532_v4  ;;  %v2266_v51 = vpack.c.bf16 (!%p419_p9), %v1184_v50, %v1183_v49  ;;  %v2716_v57 = vld [vmem:[%s3079_s5] ss:$0 sm:$0xff] (!%p419_p9)  ;;  %vm1724_vm9 = vcmask (!%p419_p9), 523712   ;;  %vm1731_vm10 = vcmask (!%p419_p9), 589312   ;;  %vm1738_vm11 = vcmask (!%p419_p9), 654912  }
  0x16   : > { %2259 = vmatprep.subr.bf16.mxu1 (!%p419_p9), %v2258_v45  ;;  %vm1745_vm12 = vcmask (!%p419_p9), 720512   ;;  %vm1752_vm13 = vcmask (!%p419_p9), 786112   ;;  %vm1759_vm14 = vcmask (!%p419_p9), 851712   ;;  %vm1766_vm15 = vcmask (!%p419_p9), 917312  }
  0x18   : > { %s478_s16 = scalar_select %p477_p10, %s2596_s25, 31 }
  0x1a   : > { %s2609_s23 = sshll.u32 %s478_s16, 3 }
  0x1b   : > { %s2615_s14 = scalar_lea.vmem %s3076_s2, %s2609_s23  ;;  %s2640_s21 = scalar_lea.vmem %s3092_s0, %s2609_s23 }
  0x1c   : > { %v533_v7 = vld [vmem:[%s2615_s14] sm:$0xff]  ;;  %v534_v8 = vld [vmem:[%s2615_s14 + $0x8] sm:$0xff]  ;;  %v535_v9 = vld [vmem:[%s2615_s14 + $0x10] sm:$0xff]  ;;  %s2888_s22 = scalar_lea.vmem %s3093_s1, %s2609_s23 }
  0x1d   : > { %2108 = vmatprep.mubr.msk.f32.mxu0 %vm551_vm0, %v533_v7  ;;  %v536_v11 = vld [vmem:[%s2615_s14 + $0x18] sm:$0xff]  ;;  %v537_v12 = vld [vmem:[%s2615_s14 + $0x20] sm:$0xff]  ;;  %v542_v14 = vld [vmem:[%s2615_s14 + $0x48] sm:$0xff] }
  0x1e   : > { %2109 = vmatmul.mubr.msk.f32.vlgmr.msra.gmra.mrb[0].mxu0 %vm551_vm0, %v534_v8  ;;  %v541_v13 = vld [vmem:[%s2615_s14 + $0x40] sm:$0xff]  ;;  %v543_v15 = vld [vmem:[%s2615_s14 + $0x50] sm:$0xff]  ;;  %v538_v16 = vld [vmem:[%s2615_s14 + $0x28] sm:$0xff] }
  0x1f   : > { %2133 = vmatpush3.msra.mxu0 %v532_v4  ;;  %2111 = vmatprep.mubr.msk.f32.mxu0 %vm551_vm0, %v535_v9  ;;  %v539_v17 = vld [vmem:[%s2615_s14 + $0x30] sm:$0xff]  ;;  %v544_v18 = vld [vmem:[%s2615_s14 + $0x58] sm:$0xff]  ;;  %v545_v19 = vld [vmem:[%s2615_s14 + $0x60] sm:$0xff] }
  0x20   : > { %2275 = vmatprep.subr.bf16.mxu0 %v2274_v10  ;;  %2120 = vmatprep.mubr.msk.f32.mxu1 %vm551_vm0, %v541_v13  ;;  %v540_v20 = vld [vmem:[%s2615_s14 + $0x38] sm:$0xff]  ;;  %v500_v21 = vld [vmem:[%s2640_s21] sm:$0xff]  ;;  %v546_v22 = vld [vmem:[%s2615_s14 + $0x68] sm:$0xff] }
  0x21   : > { %2121 = vmatmul.mubr.msk.f32.vlgmr.msra.gmra.mrb[0].mxu1 %vm551_vm0, %v542_v14  ;;  %v547_v23 = vld [vmem:[%s2615_s14 + $0x70] sm:$0xff]  ;;  %v501_v26 = vld [vmem:[%s2640_s21 + $0x8] sm:$0xff]  ;;  %v548_v28 = vld [vmem:[%s2615_s14 + $0x78] sm:$0xff]  ;;  %s2907_s14 = scalar_lea.vmem %s3086_s12, %s2609_s23  ;;  %s474_s23 = sand.u32 1, %s2460_s28  }
  0x22   : > { %2112 = vmatmul.mubr.msk.f32.gmra.mrb[2].mxu0 %vm551_vm0, %v536_v11  ;;  %2123 = vmatprep.mubr.msk.f32.mxu1 %vm551_vm0, %v543_v15  ;;  %v502_v27 = vld [vmem:[%s2640_s21 + $0x10] sm:$0xff]  ;;  %v503_v30 = vld [vmem:[%s2640_s21 + $0x18] sm:$0xff]  ;;  %v504_v31 = vld [vmem:[%s2640_s21 + $0x20] sm:$0xff]  ;;  %s475_s16 = scalar_lea.vmem [#allocation3], %s474_s23  ;;  %s1790_s24 = scalar_lea.sflag [#allocation4], %s474_s23 }
  0x23   : > { %2114 = vmatprep.mubr.msk.f32.mxu0 %vm551_vm0, %v537_v12  ;;  %v505_v32 = vld [vmem:[%s2640_s21 + $0x28] sm:$0xff]  ;;  %v506_v33 = vld [vmem:[%s2640_s21 + $0x30] sm:$0xff]  ;;  %v507_v34 = vld [vmem:[%s2640_s21 + $0x38] sm:$0xff]  ;;  %2261 = vmatpush3.bf16.msra.mxu1 %v2258_v45  ;;  %s1806_s17 = sshll.u32 %s475_s16, 4  ;;  %s3034_s17 = int_to_ptr.vmem [resolvable:$true] %s1806_s17 }
  0x24   : > { %v508_v35 = vld [vmem:[%s2640_s21 + $0x40] sm:$0xff]  ;;  %v509_v36 = vld [vmem:[%s2640_s21 + $0x48] sm:$0xff]  ;;  %v510_v37 = vld [vmem:[%s2640_s21 + $0x50] sm:$0xff]  ;;  %2263 = vmatprep.subr.bf16.mxu1 %v2262_v48  ;;  %s2406_s26 = scalar_lea.vmem %s3034_s17, 16 }
  0x25   : > { %2124 = vmatmul.mubr.msk.f32.gmra.mrb[2].mxu1 %vm551_vm0, %v544_v18  ;;  %v511_v38 = vld [vmem:[%s2640_s21 + $0x58] sm:$0xff]  ;;  %v512_v39 = vld [vmem:[%s2640_s21 + $0x60] sm:$0xff]  ;;  %v513_v40 = vld [vmem:[%s2640_s21 + $0x68] sm:$0xff]  ;;  %p2407_p11 = scmp.ne.s32.totalorder %s3034_s17, %s2406_s26 }
  0x26   : > { %2115 = vmatmul.mubr.msk.f32.gmra.mrb[4].mxu0 %vm551_vm0, %v538_v16  ;;  %2126 = vmatprep.mubr.msk.f32.mxu1 %vm551_vm0, %v545_v19  ;;  %v514_v41 = vld [vmem:[%s2640_s21 + $0x70] sm:$0xff]  ;;  %v515_v42 = vld [vmem:[%s2640_s21 + $0x78] sm:$0xff]  ;;  %s2471_s21 = smov [#allocation3]  }
  0x27   : > { %2117 = vmatprep.mubr.msk.f32.mxu0 %vm551_vm0, %v539_v17  ;;  %2265 = vmatpush3.bf16.msra.mxu1 %v2262_v48  ;;  %v1185_v9 = vld [vmem:[%s3081_s7 + $0x10] sm:$0xff]  ;;  %p2408_p12 = pnand %p2407_p11, %p2580_p5 }
  0x28   : > { %2267 = vmatprep.subr.bf16.mxu1 %v2266_v51 }
  0x29   : > { %2127 = vmatmul.mubr.msk.f32.gmra.mrb[4].mxu1 %vm551_vm0, %v546_v22  ;;  %p2409_p13 = pneg %p2408_p12 }
  0x2a   : > { %2118 = vmatmul.mubr.msk.f32.gmra.mrb[6].mxu0 %vm551_vm0, %v540_v20  ;;  %2129 = vmatprep.mubr.msk.f32.mxu1 %vm551_vm0, %v547_v23 }
  0x2b   : > { %2134 = vmatprep.mubr.msk.f32.mxu0 %vm745_vm1, %v500_v21 }
  0x2d   : > { %2130 = vmatmul.mubr.msk.f32.gmra.mrb[6].mxu1 %vm551_vm0, %v548_v28  ;;  %vm1773_vm0 = vcmask 982912  }
  0x2e   : > { %2135 = vmatmul.mubr.msk.f32.vlgmr.msra.gmra.mrb[0].mxu0 %vm745_vm1, %v501_v26 }
  0x2f   : > { %2137 = vmatprep.mubr.msk.f32.mxu0 %vm745_vm1, %v502_v27  ;;  %2277 = vmatpush3.bf16.msra.mxu0 %v2274_v10  ;;  %v1186_v10 = vld [vmem:[%s3081_s7 + $0x18] sm:$0xff] }
  0x30   : > { %2279 = vmatprep.subr.bf16.mxu0 %v2278_v29  ;;  %v2270_v16 = vpack.c.bf16 %v1186_v10, %v1185_v9 }
  0x32   : > { %2138 = vmatmul.mubr.msk.f32.gmra.mrb[2].mxu0 %vm745_vm1, %v503_v30 }
  0x33   : > { %2140 = vmatprep.mubr.msk.f32.mxu0 %vm745_vm1, %v504_v31  ;;  %2281 = vmatpush3.bf16.msra.mxu0 %v2278_v29 }
  0x36   : > { %2141 = vmatmul.mubr.msk.f32.gmra.mrb[4].mxu0 %vm745_vm1, %v505_v32 }
  0x37   : > { %2143 = vmatprep.mubr.msk.f32.mxu0 %vm745_vm1, %v506_v33 }
  0x3a   : > { %2144 = vmatmul.mubr.msk.f32.gmra.mrb[6].mxu0 %vm745_vm1, %v507_v34 }
  0x3b   : > { %2146 = vmatprep.mubr.msk.f32.mxu0 %vm745_vm1, %v508_v35 }
  0x3e   : > { %2147 = vmatmul.mubr.msk.f32.gmra.mrb[8].mxu0 %vm745_vm1, %v509_v36 }
  0x3f   : > { %2149 = vmatprep.mubr.msk.f32.mxu0 %vm745_vm1, %v510_v37 }
  0x42   : > { %2150 = vmatmul.mubr.msk.f32.gmra.mrb[10].mxu0 %vm745_vm1, %v511_v38 }
  0x43   : > { %2152 = vmatprep.mubr.msk.f32.mxu0 %vm745_vm1, %v512_v39 }
  0x46   : > { %2153 = vmatmul.mubr.msk.f32.gmra.mrb[12].mxu0 %vm745_vm1, %v513_v40 }
  0x47   : > { %2155 = vmatprep.mubr.msk.f32.mxu0 %vm745_vm1, %v514_v41 }
  0x4a   : > { %2156 = vmatmul.mubr.msk.f32.gmra.mrb[14].mxu0 %vm745_vm1, %v515_v42 }
  0xf4   : > { %v2122_v52 = vpop.f32.mrb[0].mxu1 }
  0xf5   : > { %v706_v53 = vpop.f32.mrb[1].mxu1 }
  0xf8   : > { %v2125_v54 = vpop.f32.mrb[2].mxu1 }
  0xf9   : > { %v716_v55 = vpop.f32.mrb[3].mxu1 }
  0xfc   : > { %v2711_v56 = vpop.f32.mrb[4].mxu1 }
  0xfd   : > { %v2718_v58 = vpop.f32.mrb[5].mxu1 }
 0x100   : > { %v2721_v62 = vpop.f32.mrb[6].mxu1 }
 0x101   : > { %v2136_v59 = vpop.f32.mrb[0].mxu0  ;;  %v2724_v0 = vpop.f32.mrb[7].mxu1 }
 0x102   : > { %v947_v60 = vadd.f32 %v2136_v59, %v2716_v57  ;;  %v860_v61 = vpop.f32.mrb[1].mxu0 }
 0x103   : > { %v946_v63 = vadd.f32 %v2716_v57, %v860_v61 }
 0x105   : > { %2342 = vtanh.f32 %v946_v63  ;;  %v2139_v1 = vpop.f32.mrb[2].mxu0 }
 0x106   : > { %2344 = vtanh.f32 %v947_v60  ;;  %v949_v2 = vadd.f32 %v2139_v1, %v2716_v57  ;;  %v870_v3 = vpop.f32.mrb[3].mxu0 }
 0x107   : > { %v948_v4 = vadd.f32 %v2716_v57, %v870_v3 }
 0x109   : > { %2346 = vtanh.f32 %v948_v4  ;;  %v2142_v5 = vpop.f32.mrb[4].mxu0 }
 0x10a   : > { %2348 = vtanh.f32 %v949_v2  ;;  %v951_v6 = vadd.f32 %v2142_v5, %v2716_v57  ;;  %v880_v7 = vpop.f32.mrb[5].mxu0 }
 0x10b   : > { %v950_v8 = vadd.f32 %v2716_v57, %v880_v7 }
 0x10d   : > { %2350 = vtanh.f32 %v950_v8  ;;  %v2145_v11 = vpop.f32.mrb[6].mxu0 }
 0x10e   : > { %2352 = vtanh.f32 %v951_v6  ;;  %v953_v12 = vadd.f32 %v2145_v11, %v2716_v57  ;;  %v890_v13 = vpop.f32.mrb[7].mxu0 }
 0x10f   : > { %v2737_v14 = vpop.eup %2342  ;;  %v952_v15 = vadd.f32 %v2716_v57, %v890_v13 }
 0x110   : > { %v2740_v17 = vpop.eup %2344  ;;  %2166 = vmatprep.mubr.msk.f32.mxu1 %vm989_vm2, %v2737_v14  ;;  %2230 = vmatprep.mubr.msk.f32.mxu0 %vm989_vm2, %v2737_v14 }
 0x111   : > { %2354 = vtanh.f32 %v952_v15  ;;  %v2148_v18 = vpop.f32.mrb[8].mxu0  ;;  %2167 = vmatmul.mubr.msk.f32.vlgmr.msra.gmra.mrb[8].mxu1 %vm989_vm2, %v2740_v17  ;;  %2231 = vmatmul.mubr.msk.f32.vlgmr.msra.gmra.mrb[16].mxu0 %vm989_vm2, %v2740_v17 }
 0x112   : > { %2356 = vtanh.f32 %v953_v12  ;;  %v906_v19 = vadd.f32 %v2148_v18, %v2122_v52  ;;  %v900_v20 = vpop.f32.mrb[9].mxu0  ;;  %2269 = vmatpush3.bf16.msra.mxu1 %v2266_v51 }
 0x113   : > { %v2750_v21 = vpop.eup %2346  ;;  %v901_v22 = vadd.f32 %v900_v20, %v706_v53  ;;  %2271 = vmatprep.subr.bf16.mxu1 %v2270_v16 }
 0x114   : > { %v2752_v23 = vpop.eup %2348  ;;  %v955_v24 = vadd.f32 %v2716_v57, %v906_v19  ;;  %2169 = vmatprep.mubr.msk.f32.mxu1 %vm989_vm2, %v2750_v21  ;;  %2233 = vmatprep.mubr.msk.f32.mxu0 %vm989_vm2, %v2750_v21 }
 0x115   : > { %v954_v25 = vadd.f32 %v2716_v57, %v901_v22  ;;  %v2151_v26 = vpop.f32.mrb[10].mxu0  ;;  %2170 = vmatmul.mubr.msk.f32.gmra.mrb[10].mxu1 %vm989_vm2, %v2752_v23  ;;  %2234 = vmatmul.mubr.msk.f32.gmra.mrb[18].mxu0 %vm989_vm2, %v2752_v23 }
 0x116   : > { %v916_v27 = vadd.f32 %v2151_v26, %v2125_v54  ;;  %v910_v28 = vpop.f32.mrb[11].mxu0  ;;  %2273 = vmatpush3.bf16.msra.mxu1 %v2270_v16 }
 0x117   : > { %v2764_v29 = vpop.eup %2350  ;;  %2358 = vtanh.f32 %v954_v25  ;;  %v911_v30 = vadd.f32 %v910_v28, %v716_v55 }
 0x118   : > { %v2353_v31 = vpop.eup %2352  ;;  %2360 = vtanh.f32 %v955_v24  ;;  %v957_v32 = vadd.f32 %v2716_v57, %v916_v27  ;;  %2172 = vmatprep.mubr.msk.f32.mxu1 %vm989_vm2, %v2764_v29  ;;  %2236 = vmatprep.mubr.msk.f32.mxu0 %vm989_vm2, %v2764_v29 }
 0x119   : > { %v956_v33 = vadd.f32 %v2716_v57, %v911_v30  ;;  %v2154_v34 = vpop.f32.mrb[12].mxu0  ;;  %2173 = vmatmul.mubr.msk.f32.gmra.mrb[12].mxu1 %vm989_vm2, %v2353_v31  ;;  %2237 = vmatmul.mubr.msk.f32.gmra.mrb[20].mxu0 %vm989_vm2, %v2353_v31 }
 0x11a   : > { %v926_v35 = vadd.f32 %v2154_v34, %v2711_v56  ;;  %v920_v36 = vpop.f32.mrb[13].mxu0  ;;  %v2470_v56 = vmov 0  }
 0x11b   : > { %v2355_v37 = vpop.eup %2354  ;;  %2362 = vtanh.f32 %v956_v33  ;;  %v921_v38 = vadd.f32 %v920_v36, %v2718_v58  ;;  %2340 = vset.pattern.permute.xlu0 %v2470_v56  ;;  %2341 = vset.pattern.permute.xlu1 %v2470_v56 }
 0x11c   : > { %v2357_v39 = vpop.eup %2356  ;;  %2364 = vtanh.f32 %v957_v32  ;;  %v959_v40 = vadd.f32 %v2716_v57, %v926_v35  ;;  %2175 = vmatprep.mubr.msk.f32.mxu1 %vm989_vm2, %v2355_v37  ;;  %2239 = vmatprep.mubr.msk.f32.mxu0 %vm989_vm2, %v2355_v37 }
 0x11d   : > { %v958_v41 = vadd.f32 %v2716_v57, %v921_v38  ;;  %v2157_v42 = vpop.f32.mrb[14].mxu0  ;;  %2176 = vmatmul.mubr.msk.f32.gmra.mrb[14].mxu1 %vm989_vm2, %v2357_v39  ;;  %2240 = vmatmul.mubr.msk.f32.gmra.mrb[22].mxu0 %vm989_vm2, %v2357_v39 }
 0x11e   : > { %v936_v43 = vadd.f32 %v2157_v42, %v2721_v62  ;;  %v930_v44 = vpop.f32.mrb[15].mxu0 }
 0x11f   : > { %2366 = vtanh.f32 %v958_v41  ;;  %v931_v45 = vadd.f32 %v930_v44, %v2724_v0  ;;  %v2875_v41 = vld [vmem:[%s3084_s10] ss:$0 sm:$0xff] }
 0x120   : > { %2368 = vtanh.f32 %v959_v40  ;;  %v961_v46 = vadd.f32 %v2716_v57, %v936_v43 }
 0x121   : > { %v2359_v47 = vpop.eup %2358  ;;  %v960_v48 = vadd.f32 %v2716_v57, %v931_v45  ;;  %v2823_v57 = vld [vmem:[#allocation2] ss:$0 sm:$0xff] }
 0x122   : > { %v2361_v49 = vpop.eup %2360  ;;  %2178 = vmatprep.mubr.msk.f32.mxu1 %vm989_vm2, %v2359_v47  ;;  %2242 = vmatprep.mubr.msk.f32.mxu0 %vm989_vm2, %v2359_v47 }
 0x123   : > { %2370 = vtanh.f32 %v960_v48  ;;  %2179 = vmatmul.mubr.msk.f32.gmra.mrb[16].mxu1 %vm989_vm2, %v2361_v49  ;;  %2243 = vmatmul.mubr.msk.f32.gmra.mrb[24].mxu0 %vm989_vm2, %v2361_v49 }
 0x124   : > { %2372 = vtanh.f32 %v961_v46 }
 0x125   : > { %v2363_v50 = vpop.eup %2362 }
 0x126   : > { %v2365_v51 = vpop.eup %2364  ;;  %2181 = vmatprep.mubr.msk.f32.mxu1 %vm989_vm2, %v2363_v50  ;;  %2245 = vmatprep.mubr.msk.f32.mxu0 %vm989_vm2, %v2363_v50 }
 0x127   : > { %2182 = vmatmul.mubr.msk.f32.gmra.mrb[18].mxu1 %vm989_vm2, %v2365_v51  ;;  %2246 = vmatmul.mubr.msk.f32.gmra.mrb[26].mxu0 %vm989_vm2, %v2365_v51 }
 0x129   : > { %v2367_v52 = vpop.eup %2366 }
 0x12a   : > { %v2369_v53 = vpop.eup %2368  ;;  %2184 = vmatprep.mubr.msk.f32.mxu1 %vm989_vm2, %v2367_v52  ;;  %2248 = vmatprep.mubr.msk.f32.mxu0 %vm989_vm2, %v2367_v52 }
 0x12b   : > { %2185 = vmatmul.mubr.msk.f32.gmra.mrb[20].mxu1 %vm989_vm2, %v2369_v53  ;;  %2249 = vmatmul.mubr.msk.f32.gmra.mrb[28].mxu0 %vm989_vm2, %v2369_v53 }
 0x12d   : > { %v2371_v54 = vpop.eup %2370 }
 0x12e   : > { %v2373_v55 = vpop.eup %2372  ;;  %2187 = vmatprep.mubr.msk.f32.mxu1 %vm989_vm2, %v2371_v54  ;;  %2251 = vmatprep.mubr.msk.f32.mxu0 %vm989_vm2, %v2371_v54 }
 0x12f   : > { %2188 = vmatmul.mubr.msk.f32.gmra.mrb[22].mxu1 %vm989_vm2, %v2373_v55  ;;  %2252 = vmatmul.mubr.msk.f32.gmra.mrb[30].mxu0 %vm989_vm2, %v2373_v55 }
 0x130   : > { %2198 = vmatprep.mubr.msk.f32.mxu1 %vm989_vm2, %v2737_v14 }
 0x133   : > { %2199 = vmatmul.mubr.msk.f32.vlgmr.msra.gmra.mrb[24].mxu1 %vm989_vm2, %v2740_v17 }
 0x134   : > { %2201 = vmatprep.mubr.msk.f32.mxu1 %vm989_vm2, %v2750_v21 }
 0x137   : > { %2202 = vmatmul.mubr.msk.f32.gmra.mrb[26].mxu1 %vm989_vm2, %v2752_v23 }
 0x138   : > { %2204 = vmatprep.mubr.msk.f32.mxu1 %vm989_vm2, %v2764_v29 }
 0x13b   : > { %2205 = vmatmul.mubr.msk.f32.gmra.mrb[28].mxu1 %vm989_vm2, %v2353_v31 }
 0x13c   : > { %2207 = vmatprep.mubr.msk.f32.mxu1 %vm989_vm2, %v2355_v37 }
 0x13f   : > { %2208 = vmatmul.mubr.msk.f32.gmra.mrb[30].mxu1 %vm989_vm2, %v2357_v39 }
 0x140   : > { %2210 = vmatprep.mubr.msk.f32.mxu1 %vm989_vm2, %v2359_v47 }
 0x143   : > { %2211 = vmatmul.mubr.msk.f32.gmra.mrb[32].mxu1 %vm989_vm2, %v2361_v49 }
 0x144   : > { %2213 = vmatprep.mubr.msk.f32.mxu1 %vm989_vm2, %v2363_v50 }
 0x147   : > { %2214 = vmatmul.mubr.msk.f32.gmra.mrb[34].mxu1 %vm989_vm2, %v2365_v51 }
 0x148   : > { %2216 = vmatprep.mubr.msk.f32.mxu1 %vm989_vm2, %v2367_v52 }
 0x14b   : > { %2217 = vmatmul.mubr.msk.f32.gmra.mrb[36].mxu1 %vm989_vm2, %v2369_v53 }
 0x14c   : > { %2219 = vmatprep.mubr.msk.f32.mxu1 %vm989_vm2, %v2371_v54 }
 0x14f   : > { %2220 = vmatmul.mubr.msk.f32.gmra.mrb[38].mxu1 %vm989_vm2, %v2373_v55 }
 0x1e4   : > { %v2825_v58 = vpop.f32.mrb[8].mxu1  ;;  %v2232_v59 = vpop.f32.mrb[16].mxu0 }
 0x1e5   : > { %v1518_v60 = vadd.f32 %v2232_v59, %v2823_v57  ;;  %v2828_v61 = vpop.f32.mrb[9].mxu1  ;;  %v1512_v62 = vpop.f32.mrb[17].mxu0 }
 0x1e6   : > { %v1513_v1 = vadd.f32 %v2823_v57, %v1512_v62 }
 0x1e7   : > { %1627 = vperm.xlu0 %2340, %v1518_v60  }
 0x1e8   : > { %v2830_v63 = vpop.f32.mrb[10].mxu1  ;;  %v2235_v0 = vpop.f32.mrb[18].mxu0 }
 0x1e9   : > { %v1528_v2 = vadd.f32 %v2235_v0, %v2823_v57  ;;  %v2834_v3 = vpop.f32.mrb[11].mxu1  ;;  %v1522_v4 = vpop.f32.mrb[19].mxu0 }
 0x1ea   : > { %v1523_v7 = vadd.f32 %v2823_v57, %v1522_v4 }
 0x1eb   : > { %1633 = vperm.xlu1 %2341, %v1528_v2   ;;  %1624 = vperm.xlu0 %2340, %v1513_v1  }
 0x1ec   : > { %v2836_v5 = vpop.f32.mrb[12].mxu1  ;;  %v2238_v6 = vpop.f32.mrb[20].mxu0 }
 0x1ed   : > { %v2839_v8 = vpop.f32.mrb[13].mxu1  ;;  %v1532_v9 = vpop.f32.mrb[21].mxu0  ;;  %v1538_v13 = vadd.f32 %v2238_v6, %v2823_v57 }
 0x1ee   : > { %v1533_v10 = vadd.f32 %v2823_v57, %v1532_v9  ;;  %v517_v9 = vld [vmem:[%s2888_s22 + $0x8] sm:$0xff] }
 0x1ef   : > { %1630 = vperm.xlu1 %2341, %v1523_v7   ;;  %v2895_v7 = vld [vmem:[%s3083_s9] ss:$0 sm:$0xff] }
 0x1f0   : > { %v2842_v11 = vpop.f32.mrb[14].mxu1  ;;  %v2241_v12 = vpop.f32.mrb[22].mxu0  ;;  %1636 = vperm.xlu0 %2340, %v1533_v10  }
 0x1f1   : > { %v2845_v14 = vpop.f32.mrb[15].mxu1  ;;  %v1542_v15 = vpop.f32.mrb[23].mxu0  ;;  %v1548_v17 = vadd.f32 %v2241_v12, %v2823_v57 }
 0x1f2   : > { %v1543_v16 = vadd.f32 %v2823_v57, %v1542_v15  ;;  %v516_v15 = vld [vmem:[%s2888_s22] sm:$0xff] }
 0x1f3   : > { %1639 = vperm.xlu1 %2341, %v1538_v13  }
 0x1f4   : > { %1642 = vperm.xlu0 %2340, %v1543_v16  }
 0x1f6   : > { %v2849_v18 = vpop.f32.mrb[16].mxu1  ;;  %v2244_v19 = vpop.f32.mrb[24].mxu0 }
 0x1f7   : > { %1645 = vperm.xlu1 %2341, %v1548_v17   ;;  %v2851_v20 = vpop.f32.mrb[17].mxu1  ;;  %v1552_v21 = vpop.f32.mrb[25].mxu0  ;;  %v1558_v23 = vadd.f32 %v2244_v19, %v2823_v57 }
 0x1f8   : > { %v1553_v22 = vadd.f32 %v2823_v57, %v1552_v21 }
 0x1fa   : > { %v2247_v24 = vpop.f32.mrb[26].mxu0  ;;  %1648 = vperm.xlu0 %2340, %v1553_v22   ;;  %v2855_v25 = vpop.f32.mrb[18].mxu1 }
 0x1fb   : > { %1651 = vperm.xlu1 %2341, %v1558_v23   ;;  %v2857_v26 = vpop.f32.mrb[19].mxu1  ;;  %v1562_v27 = vpop.f32.mrb[27].mxu0  ;;  %v1568_v29 = vadd.f32 %v2247_v24, %v2823_v57  ;;  %v1110_v23 = vadd.f32 %v2825_v58, %v2895_v7 }
 0x1fc   : > { %v1563_v28 = vadd.f32 %v2823_v57, %v1562_v27 }
 0x1fe   : > { %v2250_v30 = vpop.f32.mrb[28].mxu0  ;;  %1654 = vperm.xlu0 %2340, %v1563_v28   ;;  %v2861_v31 = vpop.f32.mrb[20].mxu1 }
 0x1ff   : > { %1657 = vperm.xlu1 %2341, %v1568_v29   ;;  %v2863_v32 = vpop.f32.mrb[21].mxu1  ;;  %v1572_v33 = vpop.f32.mrb[29].mxu0  ;;  %v1578_v35 = vadd.f32 %v2250_v30, %v2823_v57  ;;  %v1105_v29 = vadd.f32 %v2895_v7, %v2828_v61  ;;  %v1120_v61 = vadd.f32 %v2830_v63, %v2895_v7  ;;  %v520_v63 = vld [vmem:[%s2888_s22 + $0x20] sm:$0xff] }
 0x200   : > { %v1573_v34 = vadd.f32 %v2823_v57, %v1572_v33  ;;  %v519_v33 = vld [vmem:[%s2888_s22 + $0x18] sm:$0xff] }
 0x202   : > { %v2253_v36 = vpop.f32.mrb[30].mxu0  ;;  %1660 = vperm.xlu0 %2340, %v1573_v34   ;;  %v2867_v37 = vpop.f32.mrb[22].mxu1 }
 0x203   : > { %1663 = vperm.xlu1 %2341, %v1578_v35   ;;  %v2869_v38 = vpop.f32.mrb[23].mxu1  ;;  %v1582_v39 = vpop.f32.mrb[31].mxu0  ;;  %v1588_v42 = vadd.f32 %v2253_v36, %v2823_v57 }
 0x204   : > { %v1583_v40 = vadd.f32 %v2823_v57, %v1582_v39  ;;  %v518_v39 = vld [vmem:[%s2888_s22 + $0x10] sm:$0xff] }
 0x206   : > { %1666 = vperm.xlu0 %2340, %v1583_v40   ;;  %v2200_v43 = vpop.f32.mrb[24].mxu1 }
 0x207   : > { %v1266_v44 = vadd.f32 %v2200_v43, %v2875_v41  ;;  %1669 = vperm.xlu1 %2341, %v1588_v42   ;;  %v1260_v45 = vpop.f32.mrb[25].mxu1 }
 0x208   : > { %v1261_v46 = vadd.f32 %v2875_v41, %v1260_v45 }
 0x209   : > { %v1341_v47 = vmul.f32 1.442695, %v1266_v44 }
 0x20a   : > { %v1339_v48 = vmul.f32 1.442695, %v1261_v46  ;;  %v2203_v49 = vpop.f32.mrb[26].mxu1 }
 0x20b   : > { %2374 = vpow2.f32 %v1341_v47  ;;  %v1276_v50 = vadd.f32 %v2203_v49, %v2875_v41  ;;  %v1270_v51 = vpop.f32.mrb[27].mxu1 }
 0x20c   : > { %2376 = vpow2.f32 %v1339_v48  ;;  %v1271_v52 = vadd.f32 %v2875_v41, %v1270_v51 }
 0x20d   : > { %v1345_v53 = vmul.f32 1.442695, %v1276_v50  ;;  %v1115_v50 = vadd.f32 %v2895_v7, %v2834_v3 }
 0x20e   : > { %v1343_v54 = vmul.f32 1.442695, %v1271_v52  ;;  %v2206_v55 = vpop.f32.mrb[28].mxu1  ;;  %v521_v52 = vld [vmem:[%s2888_s22 + $0x28] sm:$0xff] }
 0x20f   : > { %2378 = vpow2.f32 %v1345_v53  ;;  %v1286_v56 = vadd.f32 %v2206_v55, %v2875_v41  ;;  %v1280_v57 = vpop.f32.mrb[29].mxu1 }
 0x210   : > { %2380 = vpow2.f32 %v1343_v54  ;;  %v1281_v59 = vadd.f32 %v2875_v41, %v1280_v57 }
 0x211   : > { %v1349_v60 = vmul.f32 1.442695, %v1286_v56 }
 0x212   : > { %v1347_v62 = vmul.f32 1.442695, %v1281_v59  ;;  %v2209_v0 = vpop.f32.mrb[30].mxu1 }
 0x213   : > { %2382 = vpow2.f32 %v1349_v60  ;;  %v1296_v1 = vadd.f32 %v2209_v0, %v2875_v41  ;;  %v1290_v2 = vpop.f32.mrb[31].mxu1 }
 0x214   : > { %2384 = vpow2.f32 %v1347_v62  ;;  %v1291_v4 = vadd.f32 %v2875_v41, %v1290_v2 }
 0x215   : > { %v2375_v6 = vpop.eup %2374  ;;  %v1353_v10 = vmul.f32 1.442695, %v1296_v1  ;;  %v1130_v1 = vadd.f32 %v2836_v5, %v2895_v7  ;;  %v522_v5 = vld [vmem:[%s2888_s22 + $0x30] sm:$0xff] }
 0x216   : > { %v2377_v12 = vpop.eup %2376  ;;  %v1372_v13 = vadd.f32 1e-06, %v2375_v6  ;;  %v1351_v16 = vmul.f32 1.442695, %v1291_v4  ;;  %v2212_v17 = vpop.f32.mrb[32].mxu1 }
 0x217   : > { %v1371_v19 = vadd.f32 1e-06, %v2377_v12  ;;  %2386 = vpow2.f32 %v1353_v10  ;;  %v1306_v21 = vadd.f32 %v2212_v17, %v2875_v41  ;;  %v1300_v22 = vpop.f32.mrb[33].mxu1  ;;  %v523_v12 = vld [vmem:[%s2888_s22 + $0x38] sm:$0xff] }
 0x218   : > { %v1388_v24 = vmul.f32 %v1372_v13, %v517_v9  ;;  %2388 = vpow2.f32 %v1351_v16  ;;  %v1301_v27 = vadd.f32 %v2875_v41, %v1300_v22  ;;  %v1125_v9 = vadd.f32 %v2895_v7, %v2839_v8 }
 0x219   : > { %v2379_v28 = vpop.eup %2378  ;;  %v1387_v30 = vmul.f32 %v1371_v19, %v516_v15  ;;  %v1357_v34 = vmul.f32 1.442695, %v1306_v21 }
 0x21a   : > { %v2381_v35 = vpop.eup %2380  ;;  %v1404_v36 = vadd.f32 %v1388_v24, %v1110_v23  ;;  %v1374_v58 = vadd.f32 1e-06, %v2379_v28  ;;  %v1355_v40 = vmul.f32 1.442695, %v1301_v27  ;;  %v2215_v42 = vpop.f32.mrb[34].mxu1  ;;  %v1140_v27 = vadd.f32 %v2842_v11, %v2895_v7 }
 0x21b   : > { %v1403_v43 = vadd.f32 %v1387_v30, %v1105_v29  ;;  %v1373_v44 = vadd.f32 1e-06, %v2381_v35  ;;  %2390 = vpow2.f32 %v1357_v34  ;;  %v1316_v45 = vadd.f32 %v2215_v42, %v2875_v41  ;;  %v1310_v46 = vpop.f32.mrb[35].mxu1  ;;  %v525_v35 = vld [vmem:[%s2888_s22 + $0x48] sm:$0xff] }
 0x21c   : > { %1420 = vst.msk [vmem:[%s2907_s14 + $0x8] sm:$0xff] %vm745_vm1, %v1404_v36  ;;  %v1390_v47 = vmul.f32 %v1374_v58, %v519_v33  ;;  %2392 = vpow2.f32 %v1355_v40  ;;  %v1311_v48 = vadd.f32 %v2875_v41, %v1310_v46  ;;  %v1135_v33 = vadd.f32 %v2895_v7, %v2845_v14  ;;  %v524_v40 = vld [vmem:[%s2888_s22 + $0x40] sm:$0xff] }
 0x21d   : > { %v2383_v49 = vpop.eup %2382  ;;  %1419 = vst.msk [vmem:[%s2907_s14] sm:$0xff] %vm745_vm1, %v1403_v43  ;;  %v1389_v51 = vmul.f32 %v1373_v44, %v518_v39  ;;  %v1361_v53 = vmul.f32 1.442695, %v1316_v45  ;;  %v1150_v44 = vadd.f32 %v2849_v18, %v2895_v7  ;;  %v1145_v46 = vadd.f32 %v2895_v7, %v2851_v20  ;;  %v526_v18 = vld [vmem:[%s2888_s22 + $0x50] sm:$0xff] }
 0x21e   : > { %v2385_v54 = vpop.eup %2384  ;;  %v1406_v55 = vadd.f32 %v1390_v47, %v1120_v61  ;;  %v1376_v56 = vadd.f32 1e-06, %v2383_v49  ;;  %v1359_v57 = vmul.f32 1.442695, %v1311_v48  ;;  %v2218_v59 = vpop.f32.mrb[36].mxu1  ;;  %v527_v47 = vld [vmem:[%s2888_s22 + $0x58] sm:$0xff] }
 0x21f   : > { %v1405_v60 = vadd.f32 %v1389_v51, %v1115_v50  ;;  %v1375_v62 = vadd.f32 1e-06, %v2385_v54  ;;  %2394 = vpow2.f32 %v1361_v53  ;;  %v1326_v0 = vadd.f32 %v2218_v59, %v2875_v41  ;;  %v1320_v3 = vpop.f32.mrb[37].mxu1 }
 0x220   : > { %1422 = vst.msk [vmem:[%s2907_s14 + $0x18] sm:$0xff] %vm745_vm1, %v1406_v55  ;;  %v1392_v2 = vmul.f32 %v1376_v56, %v521_v52  ;;  %2396 = vpow2.f32 %v1359_v57  ;;  %v1321_v4 = vadd.f32 %v2875_v41, %v1320_v3  ;;  %v1160_v53 = vadd.f32 %v2855_v25, %v2895_v7 }
 0x221   : > { %v2387_v6 = vpop.eup %2386  ;;  %1421 = vst.msk [vmem:[%s2907_s14 + $0x10] sm:$0xff] %vm745_vm1, %v1405_v60  ;;  %v1391_v10 = vmul.f32 %v1375_v62, %v520_v63  ;;  %v1365_v13 = vmul.f32 1.442695, %v1326_v0  ;;  %v1155_v55 = vadd.f32 %v2895_v7, %v2857_v26  ;;  %v529_v63 = vld [vmem:[%s2888_s22 + $0x68] sm:$0xff]  ;;  %v528_v62 = vld [vmem:[%s2888_s22 + $0x60] sm:$0xff]  ;;  %v1170_v3 = vadd.f32 %v2861_v31, %v2895_v7 }
 0x222   : > { %v2389_v15 = vpop.eup %2388  ;;  %v1408_v16 = vadd.f32 %v1392_v2, %v1130_v1  ;;  %v1378_v17 = vadd.f32 1e-06, %v2387_v6  ;;  %v1363_v19 = vmul.f32 1.442695, %v1321_v4  ;;  %v2221_v21 = vpop.f32.mrb[38].mxu1  ;;  %v1165_v2 = vadd.f32 %v2895_v7, %v2863_v32  ;;  %v531_v6 = vld [vmem:[%s2888_s22 + $0x78] sm:$0xff] }
 0x223   : > { %v1407_v22 = vadd.f32 %v1391_v10, %v1125_v9  ;;  %v1377_v23 = vadd.f32 1e-06, %v2389_v15  ;;  %2398 = vpow2.f32 %v1365_v13  ;;  %v1336_v24 = vadd.f32 %v2221_v21, %v2875_v41  ;;  %v1330_v8 = vpop.f32.mrb[39].mxu1  ;;  %v530_v13 = vld [vmem:[%s2888_s22 + $0x70] sm:$0xff] }
 0x224   : > { %1424 = vst.msk [vmem:[%s2907_s14 + $0x28] sm:$0xff] %vm745_vm1, %v1408_v16  ;;  %v1394_v28 = vmul.f32 %v1378_v17, %v523_v12  ;;  %2400 = vpow2.f32 %v1363_v19  ;;  %v1331_v29 = vadd.f32 %v2875_v41, %v1330_v8  ;;  %v1180_v16 = vadd.f32 %v2867_v37, %v2895_v7 }
 0x225   : > { %v2391_v30 = vpop.eup %2390  ;;  %1423 = vst.msk [vmem:[%s2907_s14 + $0x20] sm:$0xff] %vm745_vm1, %v1407_v22  ;;  %v1393_v34 = vmul.f32 %v1377_v23, %v522_v5  ;;  %v1369_v36 = vmul.f32 1.442695, %v1336_v24  ;;  %v1175_v32 = vadd.f32 %v2895_v7, %v2869_v38  ;;  %v1671_v22 = vlaneseq }
 0x226   : > { %v2393_v58 = vpop.eup %2392  ;;  %v1410_v11 = vadd.f32 %v1394_v28, %v1140_v27  ;;  %v1380_v39 = vadd.f32 1e-06, %v2391_v30  ;;  %v1367_v42 = vmul.f32 1.442695, %v1331_v29 }
 0x227   : > { %v1409_v43 = vadd.f32 %v1393_v34, %v1135_v33  ;;  %v1379_v41 = vadd.f32 1e-06, %v2393_v58  ;;  %2402 = vpow2.f32 %v1369_v36  ;;  %v2991_v23 = vand.u32 127, %v1671_v22 }
 0x228   : > { %1426 = vst.msk [vmem:[%s2907_s14 + $0x38] sm:$0xff] %vm745_vm1, %v1410_v11  ;;  %v1396_v14 = vmul.f32 %v1380_v39, %v525_v35  ;;  %2404 = vpow2.f32 %v1367_v42  ;;  %v2993_v24 = vshrl.u32 %v1671_v22, 7 }
 0x229   : > { %v2395_v45 = vpop.eup %2394  ;;  %1425 = vst.msk [vmem:[%s2907_s14 + $0x30] sm:$0xff] %vm745_vm1, %v1409_v43  ;;  %v1395_v61 = vmul.f32 %v1379_v41, %v524_v40  ;;  %v1677_v37 = vadd.s32 4294967288, %v2991_v23  ;;  %v1684_v27 = vadd.s32 4294967280, %v2991_v23  ;;  %v1691_v38 = vadd.s32 4294967272, %v2991_v23 }
 0x22a   : > { %v2397_v48 = vpop.eup %2396  ;;  %v1412_v49 = vadd.f32 %v1396_v14, %v1150_v44  ;;  %v1382_v50 = vadd.f32 1e-06, %v2395_v45  ;;  %v1675_v7 = vsub.s32 %v2991_v23, %v2993_v24  ;;  %v1698_v28 = vadd.s32 4294967264, %v2991_v23 }
 0x22b   : > { %v1411_v51 = vadd.f32 %v1395_v61, %v1145_v46  ;;  %v1381_v52 = vadd.f32 1e-06, %v2397_v48  ;;  %v1680_v29 = vsub.s32 %v1677_v37, %v2993_v24  ;;  %v1687_v34 = vsub.s32 %v1684_v27, %v2993_v24 }
 0x22c   : > { %1428 = vst.msk [vmem:[%s2907_s14 + $0x48] sm:$0xff] %vm745_vm1, %v1412_v49  ;;  %v1398_v54 = vmul.f32 %v1382_v50, %v527_v47  ;;  %v1705_v35 = vadd.s32 4294967256, %v2991_v23  ;;  %v1694_v36 = vsub.s32 %v1691_v38, %v2993_v24  ;;  %v1701_v11 = vsub.s32 %v1698_v28, %v2993_v24 }
 0x22d   : > { %v2399_v20 = vpop.eup %2398  ;;  %1427 = vst.msk [vmem:[%s2907_s14 + $0x40] sm:$0xff] %vm745_vm1, %v1411_v51  ;;  %v1397_v56 = vmul.f32 %v1381_v52, %v526_v18  ;;  %v1712_v42 = vadd.s32 4294967248, %v2991_v23  ;;  %v1719_v14 = vadd.s32 4294967240, %v2991_v23  ;;  %v1726_v18 = vadd.s32 4294967232, %v2991_v23 }
 0x22e   : > { %v2401_v57 = vpop.eup %2400  ;;  %v1414_v59 = vadd.f32 %v1398_v54, %v1160_v53  ;;  %v1384_v60 = vadd.f32 1e-06, %v2399_v20  ;;  %v1708_v44 = vsub.s32 %v1705_v35, %v2993_v24  ;;  %v1733_v54 = vadd.s32 4294967224, %v2991_v23 }
 0x22f   : > { %v1413_v0 = vadd.f32 %v1397_v56, %v1155_v55  ;;  %v1383_v25 = vadd.f32 1e-06, %v2401_v57  ;;  %v1715_v50 = vsub.s32 %v1712_v42, %v2993_v24  ;;  %v1722_v53 = vsub.s32 %v1719_v14, %v2993_v24 }
 0x230   : > { %1430 = vst.msk [vmem:[%s2907_s14 + $0x58] sm:$0xff] %vm745_vm1, %v1414_v59  ;;  %v1400_v1 = vmul.f32 %v1384_v60, %v529_v63  ;;  %v1729_v63 = vsub.s32 %v1726_v18, %v2993_v24  ;;  %v1740_v57 = vadd.s32 4294967216, %v2991_v23  ;;  %v1775_v22 = vadd.s32 4294967176, %v2991_v23 }
 0x231   : > { %v2403_v26 = vpop.eup %2402  ;;  %1429 = vst.msk [vmem:[%s2907_s14 + $0x50] sm:$0xff] %vm745_vm1, %v1413_v0  ;;  %v1399_v4 = vmul.f32 %v1383_v25, %v528_v62  ;;  %v1736_v62 = vsub.s32 %v1733_v54, %v2993_v24  ;;  %v1747_v0 = vadd.s32 4294967208, %v2991_v23 }
 0x232   : > { %v2405_v9 = vpop.eup %2404  ;;  %v1416_v10 = vadd.f32 %v1400_v1, %v1170_v3  ;;  %v1386_v12 = vadd.f32 1e-06, %v2403_v26 }
 0x233   : > { %v1415_v15 = vadd.f32 %v1399_v4, %v1165_v2  ;;  %v1385_v31 = vadd.f32 1e-06, %v2405_v9  ;;  %v1743_v2 = vsub.s32 %v1740_v57, %v2993_v24  ;;  %v1754_v4 = vadd.s32 4294967200, %v2991_v23 }
 0x234   : > { %1432 = vst.msk [vmem:[%s2907_s14 + $0x68] sm:$0xff] %vm745_vm1, %v1416_v10  ;;  %v1402_v17 = vmul.f32 %v1386_v12, %v531_v6  ;;  %v1750_v10 = vsub.s32 %v1747_v0, %v2993_v24  ;;  %v1761_v12 = vadd.s32 4294967192, %v2991_v23 }
 0x235   : > { %1431 = vst.msk [vmem:[%s2907_s14 + $0x60] sm:$0xff] %vm745_vm1, %v1415_v15  ;;  %v1401_v5 = vmul.f32 %v1385_v31, %v530_v13 }
 0x236   : > { %v1418_v19 = vadd.f32 %v1402_v17, %v1180_v16  ;;  %v1757_v17 = vsub.s32 %v1754_v4, %v2993_v24 }
 0x237   : > { %v1417_v21 = vadd.f32 %v1401_v5, %v1175_v32  ;;  %v1768_v32 = vadd.s32 4294967184, %v2991_v23 }
 0x238   : > { %1434 = vst.msk [vmem:[%s2907_s14 + $0x78] sm:$0xff] %vm745_vm1, %v1418_v19 }
 0x239   : > { %1433 = vst.msk [vmem:[%s2907_s14 + $0x70] sm:$0xff] %vm745_vm1, %v1417_v21  ;;  %v1764_v21 = vsub.s32 %v1761_v12, %v2993_v24  ;;  %vm1780_vm1 = vcmask 1048512   ;;  %s2410_s14 = sshll.u32 %s2471_s21, 4  ;;  %s2411_s14 = int_to_ptr.vmem [resolvable:$false] %s2410_s14 }
 0x23a   : > { %s2412_s1 = scalar_lea.vmem %s2411_s14, 32  ;;  %p2413_p0 = scmp.lt.s32.totalorder %s3034_s17, %s2411_s14 }
 0x23b   : > { %p2414_p1 = scmp.lt.s32.totalorder %s2412_s1, %s2406_s26 }
 0x23d   : > { %p2415_p2 = por %p2414_p1, %p2413_p0 }
 0x23f   : > { %p2416_p3 = pnand %p2415_p2, %p2409_p13 }
 0x266   : > { %v1628_v8 = vpop.permute.xlu0 %1627 }
 0x267   : > { %v1681_v39 = vrot.slane %v1628_v8, %v1680_v29 }
 0x26a   : > { %v1634_v30 = vpop.permute.xlu1 %1633  ;;  %v1625_v33 = vpop.permute.xlu0 %1624 }
 0x26b   : > { %v1676_v58 = vrot.slane %v1625_v33, %v1675_v7  ;;  %v1695_v45 = vrot.slane %v1634_v30, %v1694_v36  ;;  %v1771_v7 = vsub.s32 %v1768_v32, %v2993_v24  ;;  %v1778_v30 = vsub.s32 %v1775_v22, %v2993_v24 }
 0x26d   : > { %v1683_v46 = vsel %vm1682_vm3, %v1681_v39, %v1676_v58 }
 0x26e   : > { %v1631_v40 = vpop.permute.xlu1 %1630 }
 0x26f   : > { %v1688_v43 = vrot.slane %v1631_v40, %v1687_v34  ;;  %v1637_v41 = vpop.permute.xlu0 %1636 }
 0x270   : > { %v1702_v61 = vrot.slane %v1637_v41, %v1701_v11 }
 0x271   : > { %v1690_v47 = vsel %vm1689_vm4, %v1688_v43, %v1683_v46 }
 0x272   : > { %v1697_v48 = vsel %vm1696_vm5, %v1695_v45, %v1690_v47  ;;  %v1640_v49 = vpop.permute.xlu1 %1639 }
 0x273   : > { %v1709_v51 = vrot.slane %v1640_v49, %v1708_v44  ;;  %v1643_v52 = vpop.permute.xlu0 %1642  ;;  %v1704_v20 = vsel %vm1703_vm6, %v1702_v61, %v1697_v48 }
 0x274   : > { %v1716_v55 = vrot.slane %v1643_v52, %v1715_v50 }
 0x275   : > { %v1711_v59 = vsel %vm1710_vm7, %v1709_v51, %v1704_v20 }
 0x276   : > { %v1646_v56 = vpop.permute.xlu1 %1645  ;;  %v1718_v3 = vsel %vm1717_vm8, %v1716_v55, %v1711_v59 }
 0x277   : > { %v1723_v60 = vrot.slane %v1646_v56, %v1722_v53 }
 0x279   : > { %v1649_v25 = vpop.permute.xlu0 %1648  ;;  %v1725_v6 = vsel %vm1724_vm9, %v1723_v60, %v1718_v3 }
 0x27a   : > { %v1730_v1 = vrot.slane %v1649_v25, %v1729_v63  ;;  %v1652_v26 = vpop.permute.xlu1 %1651 }
 0x27b   : > { %v1737_v9 = vrot.slane %v1652_v26, %v1736_v62 }
 0x27c   : > { %v1732_v13 = vsel %vm1731_vm10, %v1730_v1, %v1725_v6 }
 0x27d   : > { %v1655_v15 = vpop.permute.xlu0 %1654  ;;  %v1739_v5 = vsel %vm1738_vm11, %v1737_v9, %v1732_v13 }
 0x27e   : > { %v1744_v31 = vrot.slane %v1655_v15, %v1743_v2  ;;  %v1658_v16 = vpop.permute.xlu1 %1657 }
 0x27f   : > { %v1751_v19 = vrot.slane %v1658_v16, %v1750_v10 }
 0x280   : > { %v1746_v37 = vsel %vm1745_vm12, %v1744_v31, %v1739_v5 }
 0x281   : > { %v1661_v8 = vpop.permute.xlu0 %1660  ;;  %v1753_v28 = vsel %vm1752_vm13, %v1751_v19, %v1746_v37 }
 0x282   : > { %v1758_v27 = vrot.slane %v1661_v8, %v1757_v17  ;;  %v1664_v38 = vpop.permute.xlu1 %1663 }
 0x283   : > { %v1765_v29 = vrot.slane %v1664_v38, %v1764_v21 }
 0x284   : > { %v1760_v33 = vsel %vm1759_vm14, %v1758_v27, %v1753_v28 }
 0x285   : > { %v1667_v34 = vpop.permute.xlu0 %1666  ;;  %v1767_v36 = vsel %vm1766_vm15, %v1765_v29, %v1760_v33 }
 0x286   : > { %v1772_v23 = vrot.slane %v1667_v34, %v1771_v7  ;;  %v1670_v35 = vpop.permute.xlu1 %1669 }
 0x287   : > { %v1779_v58 = vrot.slane %v1670_v35, %v1778_v30 }
 0x288   : > { %v1774_v11 = vsel %vm1773_vm0, %v1772_v23, %v1767_v36 }
 0x289   : > { %v1781_v24 = vsel %vm1780_vm1, %v1779_v58, %v1774_v11 }
 0x28a   : > { %1783 = vst [vmem:[%s475_s16] sm:$0x1] %v1781_v24 }
 0x28b   : > { %2419 = shalt.err (!%p2416_p3)
}
 0x28c   : > { %s2420_s25 = scalar_lea.hbm %s3032_s11, 16  ;;  %s2424_s0 = scalar_lea.hbm %s3087_s13, 32 }
 0x28d   : > { %p2421_p4 = scmp.ne.s32.totalorder %s3032_s11, %s2420_s25  ;;  %p2425_p9 = scmp.lt.u32.totalorder %s3032_s11, %s3087_s13 }
 0x28e   : > { %p2426_p10 = scmp.lt.u32.totalorder %s2424_s0, %s2420_s25  ;;  %p2428_p12 = scmp.lt.u32.totalorder %s2420_s25, %s3032_s11 }
 0x28f   : > { %p2422_p7 = pnand %p2421_p4, %p2580_p5 }
 0x290   : > { %p2427_p11 = por %p2426_p10, %p2425_p9 }
 0x291   : > { %p2423_p8 = pneg %p2422_p7 }
 0x292   : > { %p2429_p13 = por %p2428_p12, %p2427_p11 }
 0x294   : > { %p2430_p0 = pnand %p2429_p13, %p2423_p8 }
 0x296   : > { %2433 = shalt.err (!%p2430_p0)
}
 0x297   : > { %2300 = dma.vmem_to_hbm [thread:$0]  (%p2580_p5), %s3034_s17, 16, %s3032_s11, %s1790_s24  }
 0x298 PF: > { %p2306_p1 = scmp.ge.s32.totalorder %s2468_s30, 2  ;;  %s1826_s1 = sand.u32 1, %s2456_s27  }
 0x299   : > { %s1827_s26 = scalar_lea.sflag [#allocation4], %s1826_s1 }
 0x29a   : > { %p2303_p2 = pnand %p2306_p1, %p2584_p6 }
 0x29c   : > { %2451 = dma.done.wait (!%p2303_p2), %s1827_s26, 16  }
 0x29d   : > { %2453 = vsyncadd (!%p2303_p2), %s1827_s26, 4294967280  ;;  %p26_p3 = scmp.ge.s32.totalorder %s2568_s15, 4   ;;  %s3094_s27 = smov %s2460_s28 }
 0x29e   : > { %s3095_s28 = smov %s2464_s29  ;;  %s3096_s29 = smov %s2578_s18 }
 0x29f   : > { %s3097_s30 = smov %s2568_s15  ;;  %28 = sbr.rel (!%p26_p3) target bundleno = 6 (0x6), region = 121 }
 0x2a6   :  { %1831 = vsyncpa [#allocation4], 1 }
 0x2a7   :  { %1833 = vsyncpa [#allocation4 + $0x1], 1 }

</bundles_post_ra>
